<compile_context>
chip_gen: v7x
topology: tpu7x:2x2x1
jax: 0.10.0
libtpu: 0.0.40
codegen_flags: <defaults>
</compile_context>

<pallas_src>
import jax
import jax.numpy as jnp
from jax.experimental import pallas as pl
from jax.experimental.pallas import tpu as pltpu


_LANE = 128      # lane width (last dim)
_SUBLANE = 8     # f32 sublane granularity (second-last dim)


def _round_up(x, m):
    return (x + m - 1) // m * m


def _q_mlp_kernel(x_ref, w1_ref, b1_ref, w2_ref, b2_ref, o_ref):
    # Layer 1: bf16 MXU operands, f32 accumulation; bias + ReLU in f32 (VPU).
    x = x_ref[...].astype(jnp.bfloat16)                       # [TB, F_pad]
    w1 = w1_ref[...].astype(jnp.bfloat16)                     # [F_pad, H]
    h = jnp.dot(x, w1, preferred_element_type=jnp.float32)    # [TB, H] f32
    h = jnp.maximum(h + b1_ref[...], 0.0)                     # bias bcast [1, H]
    # Layer 2: bf16 operands, f32 accumulation, lane-dense (128-col) output.
    w2 = w2_ref[...].astype(jnp.bfloat16)                     # [H, 128]
    y = jnp.dot(h.astype(jnp.bfloat16), w2,
                preferred_element_type=jnp.float32)           # [TB, 128] f32
    o_ref[...] = (y + b2_ref[...]).astype(o_ref.dtype)


def q_approximator_forward(x, w1, b1, w2, b2, *, block_b=256):
    """x: [B, n_obs]; w1: [n_obs, 64]; b1: [64]; w2: [64, n_act]; b2: [n_act]."""
    B, n_obs = x.shape
    hidden = w1.shape[1]
    n_act = w2.shape[1]

    # Lane-dense padding: features and outputs padded to a multiple of 128.
    n_obs_p = _round_up(n_obs, _LANE)
    n_out_p = _round_up(n_act, _LANE)

    # Batch tile: multiple of 8 sublanes, capped (keeps h = [TB,64] f32 in vregs).
    tb = min(_round_up(max(B, 1), _SUBLANE), block_b)
    B_p = _round_up(B, tb)

    f32 = jnp.float32
    x_p = jnp.zeros((B_p, n_obs_p), f32).at[:B, :n_obs].set(x.astype(f32))
    w1_p = jnp.zeros((n_obs_p, hidden), f32).at[:n_obs, :].set(w1.astype(f32))
    b1_2d = b1.reshape(1, hidden).astype(f32)
    w2_p = jnp.zeros((hidden, n_out_p), f32).at[:, :n_act].set(w2.astype(f32))
    b2_2d = jnp.zeros((1, n_out_p), f32).at[0, :n_act].set(b2.astype(f32))

    out = pl.pallas_call(
        _q_mlp_kernel,
        out_shape=jax.ShapeDtypeStruct((B_p, n_out_p), f32),
        grid=(B_p // tb,),
        in_specs=[
            pl.BlockSpec((tb, n_obs_p), lambda i: (i, 0)),        # x: batch-tiled
            pl.BlockSpec((n_obs_p, hidden), lambda i: (0, 0)),    # w1: resident
            pl.BlockSpec((1, hidden), lambda i: (0, 0)),          # b1: resident
            pl.BlockSpec((hidden, n_out_p), lambda i: (0, 0)),    # w2: resident
            pl.BlockSpec((1, n_out_p), lambda i: (0, 0)),         # b2: resident
        ],
        out_specs=pl.BlockSpec((tb, n_out_p), lambda i: (i, 0)),
        compiler_params=pltpu.CompilerParams(
            dimension_semantics=("parallel",)),                    # 2-TC shard on v7x
    )(x_p, w1_p, b1_2d, w2_p, b2_2d)

    return out[:B, :n_act]


def _ref_forward_f32(x, w1, b1, w2, b2):
    h = jnp.maximum(x @ w1 + b1, 0.0)
    return h @ w2 + b2


def _ref_forward_bf16(x, w1, b1, w2, b2):
    # Same numerics as the kernel: bf16 MXU operands, f32 accumulation.
    h = jnp.dot(x.astype(jnp.bfloat16), w1.astype(jnp.bfloat16),
                preferred_element_type=jnp.float32) + b1
    h = jnp.maximum(h, 0.0)
    return jnp.dot(h.astype(jnp.bfloat16), w2.astype(jnp.bfloat16),
                   preferred_element_type=jnp.float32) + b2


if __name__ == "__main__":
    # Small shapes consistent with the module: n_observations=32, n_actions=4.
    batch = 8
    n_observations = 32
    hidden = 64
    n_actions = 4

    key = jax.random.PRNGKey(0)
    kx, kw1, kb1, kw2, kb2 = jax.random.split(key, 5)

    x = jax.random.normal(kx, (batch, n_observations), dtype=jnp.float32)

    # Deterministic init mimicking torch.nn.Linear (uniform in +/- 1/sqrt(fan_in)).
    lim1 = 1.0 / jnp.sqrt(float(n_observations))
    lim2 = 1.0 / jnp.sqrt(float(hidden))
    # Stored pre-transposed: [in, out]
    w1 = jax.random.uniform(kw1, (n_observations, hidden), jnp.float32, -lim1, lim1)
    b1 = jax.random.uniform(kb1, (hidden,), jnp.float32, -lim1, lim1)
    w2 = jax.random.uniform(kw2, (hidden, n_actions), jnp.float32, -lim2, lim2)
    b2 = jax.random.uniform(kb2, (n_actions,), jnp.float32, -lim2, lim2)

    out = q_approximator_forward(x, w1, b1, w2, b2)
    out = jax.block_until_ready(out)
    assert out.shape == (batch, n_actions)

    # Exact-precision reference (same bf16-operand / f32-accumulate math).
    ref_bf16 = _ref_forward_bf16(x, w1, b1, w2, b2)
    assert jnp.allclose(out, ref_bf16, atol=2e-3, rtol=2e-3), "mismatch vs bf16 ref"

    # Sanity check vs full-f32 reference (bf16 operand rounding bounded).
    ref_f32 = _ref_forward_f32(x, w1, b1, w2, b2)
    assert jnp.allclose(out, ref_f32, atol=3e-2, rtol=3e-2), "mismatch vs f32 ref"

    print("KERNEL_OK")
</pallas_src>

<mosaic_0001>
module attributes {stable_mosaic.version = 11 : i64} {
  func.func @_q_mlp_kernel(%arg0: i32, %arg1: memref<8x128xf32, #tpu.memory_space<vmem>>, %arg2: memref<128x64xf32, #tpu.memory_space<vmem>>, %arg3: memref<1x64xf32, #tpu.memory_space<vmem>>, %arg4: memref<64x128xf32, #tpu.memory_space<vmem>>, %arg5: memref<1x128xf32, #tpu.memory_space<vmem>>, %arg6: memref<8x128xf32, #tpu.memory_space<vmem>>) attributes {dimension_semantics = [#tpu.dimension_semantics<parallel>], iteration_bounds = array<i64: 1>, scalar_prefetch = 0 : i64, scratch_operands = 0 : i64, tpu.core_type = #tpu.core_type<tc>, window_params = [{transform_indices = @transform_0, window_bounds = array<i64: 8, 128>}, {pipeline_mode = #tpu.pipeline_mode<synchronous>, transform_indices = @transform_1, window_bounds = array<i64: 128, 64>}, {pipeline_mode = #tpu.pipeline_mode<synchronous>, transform_indices = @transform_2, window_bounds = array<i64: 1, 64>}, {pipeline_mode = #tpu.pipeline_mode<synchronous>, transform_indices = @transform_3, window_bounds = array<i64: 64, 128>}, {pipeline_mode = #tpu.pipeline_mode<synchronous>, transform_indices = @transform_4, window_bounds = array<i64: 1, 128>}, {transform_indices = @transform_5, window_bounds = array<i64: 8, 128>}]} {
    %c0 = arith.constant 0 : index
    %c0_0 = arith.constant 0 : index
    %0 = vector.load %arg1[%c0, %c0_0] : memref<8x128xf32, #tpu.memory_space<vmem>>, vector<8x128xf32>
    %1 = arith.truncf %0 : vector<8x128xf32> to vector<8x128xbf16>
    %c0_1 = arith.constant 0 : index
    %c0_2 = arith.constant 0 : index
    %2 = vector.load %arg2[%c0_1, %c0_2] : memref<128x64xf32, #tpu.memory_space<vmem>>, vector<128x64xf32>
    %3 = arith.truncf %2 : vector<128x64xf32> to vector<128x64xbf16>
    %cst = arith.constant dense<0.000000e+00> : vector<8x64xf32>
    %4 = tpu.matmul %1, %3, %cst {dimension_numbers = #tpu.dot_dimension_numbers<[1], [0], [0], [1], [0, 0, 1, 1], [], []>} : vector<8x128xbf16>, vector<128x64xbf16>, vector<8x64xf32> -> vector<8x64xf32>
    %c0_3 = arith.constant 0 : index
    %c0_4 = arith.constant 0 : index
    %5 = vector.load %arg3[%c0_3, %c0_4] : memref<1x64xf32, #tpu.memory_space<vmem>>, vector<1x64xf32>
    %6 = vector.broadcast %5 : vector<1x64xf32> to vector<8x64xf32>
    %7 = arith.addf %4, %6 : vector<8x64xf32>
    %cst_5 = arith.constant 0.000000e+00 : f32
    %8 = vector.broadcast %cst_5 : f32 to vector<8x64xf32>
    %9 = arith.maximumf %7, %8 : vector<8x64xf32>
    %c0_6 = arith.constant 0 : index
    %c0_7 = arith.constant 0 : index
    %10 = vector.load %arg4[%c0_6, %c0_7] : memref<64x128xf32, #tpu.memory_space<vmem>>, vector<64x128xf32>
    %11 = arith.truncf %10 : vector<64x128xf32> to vector<64x128xbf16>
    %12 = arith.truncf %9 : vector<8x64xf32> to vector<8x64xbf16>
    %cst_8 = arith.constant dense<0.000000e+00> : vector<8x128xf32>
    %13 = tpu.matmul %12, %11, %cst_8 {dimension_numbers = #tpu.dot_dimension_numbers<[1], [0], [0], [1], [0, 0, 1, 1], [], []>} : vector<8x64xbf16>, vector<64x128xbf16>, vector<8x128xf32> -> vector<8x128xf32>
    %c0_9 = arith.constant 0 : index
    %c0_10 = arith.constant 0 : index
    %14 = vector.load %arg5[%c0_9, %c0_10] : memref<1x128xf32, #tpu.memory_space<vmem>>, vector<1x128xf32>
    %15 = vector.broadcast %14 : vector<1x128xf32> to vector<8x128xf32>
    %16 = arith.addf %13, %15 : vector<8x128xf32>
    %c0_11 = arith.constant 0 : index
    %c0_12 = arith.constant 0 : index
    %17 = vector.load %arg6[%c0_11, %c0_12] : memref<8x128xf32, #tpu.memory_space<vmem>>, vector<8x128xf32>
    tpu.vector_store %arg6[%c0_11, %c0_12], %16 {strides = array<i32>} : memref<8x128xf32, #tpu.memory_space<vmem>>, vector<8x128xf32>,
    return
  }
  func.func @transform_0(%arg0: i32) -> (i32, i32) {
    %c0_i32 = arith.constant 0 : i32
    %c0_i32_0 = arith.constant 0 : i32
    return %arg0, %c0_i32 : i32, i32
  }
  func.func @transform_1(%arg0: i32) -> (i32, i32) {
    %c0_i32 = arith.constant 0 : i32
    %c0_i32_0 = arith.constant 0 : i32
    %c0_i32_1 = arith.constant 0 : i32
    return %c0_i32, %c0_i32_0 : i32, i32
  }
  func.func @transform_2(%arg0: i32) -> (i32, i32) {
    %c0_i32 = arith.constant 0 : i32
    %c0_i32_0 = arith.constant 0 : i32
    %c0_i32_1 = arith.constant 0 : i32
    return %c0_i32, %c0_i32_0 : i32, i32
  }
  func.func @transform_3(%arg0: i32) -> (i32, i32) {
    %c0_i32 = arith.constant 0 : i32
    %c0_i32_0 = arith.constant 0 : i32
    %c0_i32_1 = arith.constant 0 : i32
    return %c0_i32, %c0_i32_0 : i32, i32
  }
  func.func @transform_4(%arg0: i32) -> (i32, i32) {
    %c0_i32 = arith.constant 0 : i32
    %c0_i32_0 = arith.constant 0 : i32
    %c0_i32_1 = arith.constant 0 : i32
    return %c0_i32, %c0_i32_0 : i32, i32
  }
  func.func @transform_5(%arg0: i32) -> (i32, i32) {
    %c0_i32 = arith.constant 0 : i32
    %c0_i32_0 = arith.constant 0 : i32
    return %arg0, %c0_i32 : i32, i32
  }
}

</mosaic_0001>

<bundles_post_ra>
// kernel: tpu_custom_call.1
= control target key start
LH: loop header
LB: loop body
LE: loop exit
PB: predicated region body
PF: predicated region fallthrough
CT: control target
= control target key end

     0   :  { %v251_v3 = vmov 0.0   ;;  %vm252_vm0 = vmmov 0   ;;  %s377_s0 = inlined_call_operand.vmem [shape: f32[8,128], index: 0, kind: input, shape index: {}]   ;;  %s378_s1 = inlined_call_operand.vmem [shape: f32[128,64], index: 1, kind: input, shape index: {}]   ;;  %s379_s2 = inlined_call_operand.vmem [shape: f32[1,64], index: 2, kind: input, shape index: {}]   ;;  %s380_s3 = inlined_call_operand.vmem [shape: f32[64,128], index: 3, kind: input, shape index: {}]   ;;  %s381_s4 = inlined_call_operand.vmem [shape: f32[1,128], index: 4, kind: input, shape index: {}]   ;;  %s382_s5 = inlined_call_operand.hbm [shape: f32[8,128], index: 5, kind: output, shape index: {}]  }
   0x1   :  { %v24_v0 = vld [vmem:[%s378_s1] sm:$0xff]  ;;  %v25_v1 = vld [vmem:[%s378_s1 + $0x8] sm:$0xff]  ;;  %v26_v2 = vld [vmem:[%s378_s1 + $0x10] sm:$0xff]  ;;  %192 = vmatprep.subr.bf16.mxu0 %v251_v3  ;;  %208 = vmatprep.mubr.msk.bf16.mxu0 %vm252_vm0, %v251_v3 }
   0x2   :  { %v40_v4 = vpack.c.bf16 %v25_v1, %v24_v0  ;;  %v27_v5 = vld [vmem:[%s378_s1 + $0x18] sm:$0xff]  ;;  %212 = vmatprep.subr.bf16.mxu1 %v251_v3  ;;  %220 = vmatprep.mubr.msk.bf16.mxu1 %vm252_vm0, %v251_v3  ;;  %v28_v7 = vld [vmem:[%s378_s1 + $0x20] sm:$0xff]  ;;  %v29_v8 = vld [vmem:[%s378_s1 + $0x28] sm:$0xff] }
   0x3   :  { %v41_v6 = vpack.c.bf16 %v27_v5, %v26_v2  ;;  %v96_v9 = vld [vmem:[%s380_s3] sm:$0xff]  ;;  %v97_v10 = vld [vmem:[%s380_s3 + $0x8] sm:$0xff]  ;;  %v98_v11 = vld [vmem:[%s380_s3 + $0x10] sm:$0xff]  ;;  %v42_v13 = vpack.c.bf16 %v29_v8, %v28_v7 }
   0x4   :  { %193 = vmatpush3.bf16.msra.mxu0 %v40_v4  ;;  %v99_v12 = vld [vmem:[%s380_s3 + $0x18] sm:$0xff]  ;;  %v104_v14 = vpack.c.bf16 %v97_v10, %v96_v9 }
   0x5   :  { %194 = vmatprep.subr.bf16.mxu0 %v251_v3 }
   0x8   :  { %195 = vmatpush3.bf16.msra.mxu0 %v41_v6 }
   0x9   :  { %10 = vsyncpa [#allocation3], 0  ;;  %196 = vmatprep.subr.bf16.mxu0 %v251_v3  ;;  %v30_v15 = vld [vmem:[%s378_s1 + $0x30] sm:$0xff]  ;;  %v31_v16 = vld [vmem:[%s378_s1 + $0x38] sm:$0xff]  ;;  %213 = vmatpush3.bf16.msra.mxu1 %v104_v14  ;;  %v105_v17 = vpack.c.bf16 %v99_v12, %v98_v11  ;;  %vm116_vm1 = vcmask 523264  }
   0xa   :  { %214 = vmatprep.subr.bf16.mxu1 %v251_v3  ;;  %v43_v18 = vpack.c.bf16 %v31_v16, %v30_v15  ;;  %v32_v19 = vld [vmem:[%s378_s1 + $0x40] sm:$0xff]  ;;  %v33_v20 = vld [vmem:[%s378_s1 + $0x48] sm:$0xff]  ;;  %v34_v22 = vld [vmem:[%s378_s1 + $0x50] sm:$0xff] }
   0xb   :  { %v44_v21 = vpack.c.bf16 %v33_v20, %v32_v19  ;;  %v35_v23 = vld [vmem:[%s378_s1 + $0x58] sm:$0xff]  ;;  %v36_v25 = vld [vmem:[%s378_s1 + $0x60] sm:$0xff]  ;;  %v37_v26 = vld [vmem:[%s378_s1 + $0x68] sm:$0xff] }
   0xc   :  { %197 = vmatpush3.bf16.msra.mxu0 %v42_v13  ;;  %v45_v24 = vpack.c.bf16 %v35_v23, %v34_v22  ;;  %v46_v27 = vpack.c.bf16 %v37_v26, %v36_v25  ;;  %v38_v28 = vld [vmem:[%s378_s1 + $0x70] sm:$0xff]  ;;  %v39_v29 = vld [vmem:[%s378_s1 + $0x78] sm:$0xff]  ;;  %v22_v31 = vld [vmem:[%s377_s0] sm:$0xff] }
   0xd   :  { %198 = vmatprep.subr.bf16.mxu0 %v251_v3  ;;  %215 = vmatpush3.bf16.msra.mxu1 %v105_v17  ;;  %v47_v30 = vpack.c.bf16 %v39_v29, %v38_v28  ;;  %v23_v32 = vpack.c.bf16 %v22_v31, %v22_v31  ;;  %v100_v33 = vld [vmem:[%s380_s3 + $0x20] sm:$0xff]  ;;  %v101_v34 = vld [vmem:[%s380_s3 + $0x28] sm:$0xff]  ;;  %v102_v36 = vld [vmem:[%s380_s3 + $0x30] sm:$0xff] }
   0xe   :  { %216 = vmatprep.subr.bf16.mxu1 %v251_v3  ;;  %v106_v35 = vpack.c.bf16 %v101_v34, %v100_v33  ;;  %v103_v37 = vld [vmem:[%s380_s3 + $0x38] sm:$0xff]  ;;  %v175_v39 = vld [vmem:[%s379_s2] ss:$0 sm:$0xff]  ;;  %s253_s3 = smov [#allocation2]  }
   0xf   :  { %v107_v38 = vpack.c.bf16 %v103_v37, %v102_v36  ;;  %v176_v47 = vld [vmem:[%s381_s4] ss:$0 sm:$0xff]  ;;  %s167_s20 = sshll.u32 %s253_s3, 4  ;;  %s168_s20 = int_to_ptr.vmem [resolvable:$true] %s167_s20 }
  0x10   :  { %199 = vmatpush3.bf16.msra.mxu0 %v43_v18  ;;  %s227_s2 = scalar_lea.vmem %s168_s20, 128  ;;  %p232_p1 = scmp.lt.s32.totalorder %s168_s20, %s168_s20 }
  0x11   :  { %200 = vmatprep.subr.bf16.mxu0 %v251_v3  ;;  %217 = vmatpush3.bf16.msra.mxu1 %v106_v35  ;;  %p228_p0 = scmp.ne.s32.totalorder %s168_s20, %s227_s2  ;;  %p233_p2 = scmp.lt.s32.totalorder %s227_s2, %s227_s2 }
  0x12   :  { %218 = vmatprep.subr.bf16.mxu1 %v251_v3 }
  0x13   :  { %p234_p3 = por %p233_p2, %p232_p1 }
  0x14   :  { %201 = vmatpush3.bf16.msra.mxu0 %v44_v21 }
  0x15   :  { %202 = vmatprep.subr.bf16.mxu0 %v251_v3  ;;  %219 = vmatpush3.bf16.msra.mxu1 %v107_v38  ;;  %p235_p4 = pnand %p234_p3, %p228_p0 }
  0x18   :  { %203 = vmatpush3.bf16.msra.mxu0 %v45_v24 }
  0x19   :  { %204 = vmatprep.subr.bf16.mxu0 %v251_v3 }
  0x1c   :  { %205 = vmatpush3.bf16.msra.mxu0 %v46_v27 }
  0x1d   :  { %206 = vmatprep.subr.bf16.mxu0 %v251_v3 }
  0x20   :  { %207 = vmatpush3.bf16.msra.mxu0 %v47_v30 }
  0x23   :  { %209 = vmatmul.mubr.bf16.vlgmr.msra.gmra.mrb[0].mxu0 %v23_v32 }
  0xf6   :  { %v89_v40 = vpop.f32.mrb[0].mxu0 }
  0xf7   :  { %v90_v41 = vadd.f32 %v175_v39, %v89_v40  ;;  %v210_v42 = vpop.f32.mrb[1].mxu0 }
  0xf8   :  { %v92_v43 = vpop.f32.mrb[2].mxu0 }
  0xf9   :  { %v95_v44 = vmax.f32 %v90_v41, 0.0  ;;  %v211_v45 = vpop.f32.mrb[3].mxu0 }
  0xfb   :  { %v108_v46 = vpack.c.bf16 %v95_v44, %v95_v44 }
  0xfd   :  { %221 = vmatmul.mubr.msk.bf16.vlgmr.msra.gmra.mrb[0].mxu1 %vm116_vm1, %v108_v46 }
 0x1d0   :  { %v154_v48 = vpop.f32.mrb[0].mxu1 }
 0x1d1   :  { %v155_v49 = vadd.f32 %v176_v47, %v154_v48  ;;  %v222_v50 = vpop.f32.mrb[1].mxu1 }
 0x1d2   :  { %v157_v51 = vpop.f32.mrb[2].mxu1 }
 0x1d3   :  { %160 = vst [vmem:[#allocation2] sm:$0xff] %v155_v49  ;;  %v223_v52 = vpop.f32.mrb[3].mxu1 }
 0x1d4   :  { %238 = shalt.err (!%p235_p4)
}
 0x1d5   :  { %s239_s4 = scalar_lea.hbm %s382_s5, 128 }
 0x1d6   :  { %p240_p5 = scmp.ne.s32.totalorder %s382_s5, %s239_s4  ;;  %p243_p6 = scmp.lt.u32.totalorder %s239_s4, %s382_s5 }
 0x1d8   :  { %p245_p7 = pnand %p243_p6, %p240_p5 }
 0x1da   :  { %248 = shalt.err (!%p245_p7)
}
 0x1db   :  { %170 = dma.vmem_to_hbm [thread:$0]  %s168_s20, 128, %s382_s5, [#allocation3]  }
 0x1dc   :  { %249 = dma.done.wait [#allocation3], 128  }
 0x1dd   :  { %250 = vsyncadd [#allocation3], 4294967168 }
 0x1de   :  { %174 = vsyncpa [#allocation3], 1 }

</bundles_post_ra>
